<compile_context>
chip_gen: v7x
topology: tpu7x:2x2x1
jax: 0.10.0
libtpu: 0.0.40
codegen_flags: <defaults>
</compile_context>

<pallas_src>
import jax
import jax.numpy as jnp
from jax.experimental import pallas as pl
from jax.experimental.pallas import tpu as pltpu


_LANE = 128
_TARGET_BLOCK_BYTES = 2 * 1024 * 1024      # ~2 MiB per block (double-buffered in+out fits easily)
_VMEM_LIMIT_BYTES = 48 * 1024 * 1024       # safe on v5e/v6e (128 MiB phys) and v7x (64 MiB phys)


def _norm_kernel(x_ref, o_ref):
    # Block shape: (..., L, Nt).  Normalize over the L (second-to-last) axis.
    x = x_ref[...].astype(jnp.float32)
    u = jnp.mean(x, axis=-2, keepdims=True)              # (..., 1, Nt)   XLU reduce
    d = x - u                                            # (..., L, Nt)   VPU
    sigma2 = jnp.mean(d * d, axis=-2, keepdims=True)     # (..., 1, Nt)   VPU + XLU
    # rsqrt once per lane row (EUP slot) + multiply over the tile (VPU),
    # instead of a broadcast divide over the whole tile.  No eps: matches torch ref.
    o_ref[...] = (d * jax.lax.rsqrt(sigma2)).astype(o_ref.dtype)


def _choose_lane_tile(n_lanes, length, elem_bytes):
    """Largest multiple of 128 that divides n_lanes with length*tile*bytes <= ~2 MiB."""
    if n_lanes % _LANE != 0:
        return n_lanes                                   # full-extent block is the only legal option
    max_t = (_TARGET_BLOCK_BYTES // max(1, length * elem_bytes)) // _LANE * _LANE
    t = min(n_lanes, max(max_t, _LANE))
    while n_lanes % t != 0:
        t -= _LANE
    return t


def _choose_batch_tile(batch, length, padded_lanes, elem_bytes):
    """Largest divisor of `batch` whose (padded) block stays under ~2 MiB."""
    per_batch = max(1, length * padded_lanes * elem_bytes)
    bt = min(batch, max(1, _TARGET_BLOCK_BYTES // per_batch))
    while batch % bt != 0:
        bt -= 1
    return bt


def normalization(x):
    """x: (B, L, D) -> (B, L, D), normalized over L independently per (batch, dim)."""
    B, L, D = x.shape
    elem_bytes = jnp.dtype(x.dtype).itemsize
    padded_d = -(-D // _LANE) * _LANE                    # lanes the last dim occupies in VMEM

    if D % _LANE == 0:
        # ---- Path A: D already lane-aligned -> keep layout, tile the D (lane) axis.
        dt = _choose_lane_tile(D, L, elem_bytes)
        spec = pl.BlockSpec((1, L, dt), lambda b, j: (b, 0, j))
        return pl.pallas_call(
            _norm_kernel,
            out_shape=jax.ShapeDtypeStruct((B, L, D), x.dtype),
            grid_spec=pltpu.PrefetchScalarGridSpec(
                num_scalar_prefetch=0,
                grid=(B, D // dt),
                in_specs=[spec],
                out_specs=spec,
            ),
            compiler_params=pltpu.CompilerParams(
                dimension_semantics=("parallel", "parallel"),
                vmem_limit_bytes=_VMEM_LIMIT_BYTES,
            ),
        )(x)

    if padded_d <= 4 * D:
        # ---- Path B: unaligned but not tiny D -> stay in-layout, block over batch.
        # 1x HBM read + 1x HBM write (no wrapper transposes); lane padding <= 4x
        # only burns VPU slack, which HBM bandwidth hides.
        bt = _choose_batch_tile(B, L, padded_d, elem_bytes)
        spec = pl.BlockSpec((bt, L, D), lambda b: (b, 0, 0))
        return pl.pallas_call(
            _norm_kernel,
            out_shape=jax.ShapeDtypeStruct((B, L, D), x.dtype),
            grid_spec=pltpu.PrefetchScalarGridSpec(
                num_scalar_prefetch=0,
                grid=(B // bt,),
                in_specs=[spec],
                out_specs=spec,
            ),
            compiler_params=pltpu.CompilerParams(
                dimension_semantics=("parallel",),
                vmem_limit_bytes=_VMEM_LIMIT_BYTES,
            ),
        )(x)

    # ---- Path C: tiny D -> pack (B, D) into the lane axis so stores are lane-dense:
    # (B, L, D) -> (L, B*D).  The L-reduction is independent per (b, d) column,
    # so this repacking is exact.
    N = B * D
    x2 = jnp.transpose(x, (1, 0, 2)).reshape(L, N)
    nt = _choose_lane_tile(N, L, elem_bytes)
    spec = pl.BlockSpec((L, nt), lambda j: (0, j))
    out2 = pl.pallas_call(
        _norm_kernel,
        out_shape=jax.ShapeDtypeStruct((L, N), x.dtype),
        grid_spec=pltpu.PrefetchScalarGridSpec(
            num_scalar_prefetch=0,
            grid=(N // nt,),
            in_specs=[spec],
            out_specs=spec,
        ),
        compiler_params=pltpu.CompilerParams(
            dimension_semantics=("parallel",),
            vmem_limit_bytes=_VMEM_LIMIT_BYTES,
        ),
    )(x2)
    return jnp.transpose(out2.reshape(L, B, D), (1, 0, 2))


def _reference(x):
    u = jnp.mean(x, axis=1, keepdims=True)
    sigma2 = jnp.mean((x - u) ** 2, axis=1, keepdims=True)
    return (x - u) / jnp.sqrt(sigma2)


if __name__ == "__main__":
    key = jax.random.PRNGKey(0)
    k1, k2, k3, k4 = jax.random.split(key, 4)

    norm = jax.jit(normalization)

    # Path C: tiny dim (lane-pack path).
    x1 = jax.random.normal(k1, (4, 96, 8), dtype=jnp.float32)
    out1 = jax.block_until_ready(norm(x1))
    assert out1.shape == x1.shape
    assert jnp.allclose(out1, _reference(x1), atol=1e-5, rtol=1e-5), "mismatch (lane-pack path)"

    # Path B: unaligned but moderate dim (in-layout path).
    x2 = jax.random.normal(k2, (2, 64, 48), dtype=jnp.float32)
    out2 = jax.block_until_ready(norm(x2))
    assert out2.shape == x2.shape
    assert jnp.allclose(out2, _reference(x2), atol=1e-5, rtol=1e-5), "mismatch (in-layout path)"

    # Path A: lane-aligned dim (D-tiled path).
    x3 = jax.random.normal(k3, (2, 64, 256), dtype=jnp.float32)
    out3 = jax.block_until_ready(norm(x3))
    assert out3.shape == x3.shape
    assert jnp.allclose(out3, _reference(x3), atol=1e-5, rtol=1e-5), "mismatch (D-tiled path)"

    # Shape from the module's own test (b=32, length=336, dim=8).
    x4 = jax.random.normal(k4, (32, 336, 8), dtype=jnp.float32)
    out4 = jax.block_until_ready(norm(x4))
    assert out4.shape == x4.shape
    assert jnp.allclose(out4, _reference(x4), atol=1e-5, rtol=1e-5), "mismatch (module test shape)"

    print("KERNEL_OK")
</pallas_src>

<mosaic_0001>
module attributes {stable_mosaic.version = 11 : i64} {
  func.func @_norm_kernel(%arg0: i32, %arg1: memref<96x32xf32, #tpu.memory_space<vmem>>, %arg2: memref<96x32xf32, #tpu.memory_space<vmem>>) attributes {dimension_semantics = [#tpu.dimension_semantics<parallel>], iteration_bounds = array<i64: 1>, scalar_prefetch = 0 : i64, scratch_operands = 0 : i64, tpu.core_type = #tpu.core_type<tc>, window_params = [{transform_indices = @transform_0, window_bounds = array<i64: 96, 32>}, {transform_indices = @transform_1, window_bounds = array<i64: 96, 32>}]} {
    %c0 = arith.constant 0 : index
    %c0_0 = arith.constant 0 : index
    %0 = vector.load %arg1[%c0, %c0_0] : memref<96x32xf32, #tpu.memory_space<vmem>>, vector<96x32xf32>
    %cst = arith.constant dense<0.000000e+00> : vector<32xf32>
    %1 = vector.multi_reduction <add>, %0, %cst [0] : vector<96x32xf32> to vector<32xf32>
    %2 = vector.shape_cast %1 : vector<32xf32> to vector<1x32xf32>
    %cst_1 = arith.constant 9.600000e+01 : f32
    %3 = vector.broadcast %cst_1 : f32 to vector<1x32xf32>
    %4 = arith.divf %2, %3 : vector<1x32xf32>
    %5 = vector.broadcast %4 : vector<1x32xf32> to vector<96x32xf32>
    %6 = arith.subf %0, %5 : vector<96x32xf32>
    %7 = arith.mulf %6, %6 : vector<96x32xf32>
    %cst_2 = arith.constant dense<0.000000e+00> : vector<32xf32>
    %8 = vector.multi_reduction <add>, %7, %cst_2 [0] : vector<96x32xf32> to vector<32xf32>
    %9 = vector.shape_cast %8 : vector<32xf32> to vector<1x32xf32>
    %cst_3 = arith.constant 9.600000e+01 : f32
    %10 = vector.broadcast %cst_3 : f32 to vector<1x32xf32>
    %11 = arith.divf %9, %10 : vector<1x32xf32>
    %12 = math.rsqrt %11 : vector<1x32xf32>
    %13 = vector.broadcast %12 : vector<1x32xf32> to vector<96x32xf32>
    %14 = arith.mulf %6, %13 : vector<96x32xf32>
    %c0_4 = arith.constant 0 : index
    %c0_5 = arith.constant 0 : index
    %15 = vector.load %arg2[%c0_4, %c0_5] : memref<96x32xf32, #tpu.memory_space<vmem>>, vector<96x32xf32>
    tpu.vector_store %arg2[%c0_4, %c0_5], %14 {strides = array<i32>} : memref<96x32xf32, #tpu.memory_space<vmem>>, vector<96x32xf32>,
    return
  }
  func.func @transform_0(%arg0: i32) -> (i32, i32) {
    %c0_i32 = arith.constant 0 : i32
    %c0_i32_0 = arith.constant 0 : i32
    return %c0_i32, %arg0 : i32, i32
  }
  func.func @transform_1(%arg0: i32) -> (i32, i32) {
    %c0_i32 = arith.constant 0 : i32
    %c0_i32_0 = arith.constant 0 : i32
    return %c0_i32, %arg0 : i32, i32
  }
}

</mosaic_0001>

<bundles_post_ra>
// kernel: normalization.1
= control target key start
LH: loop header
LB: loop body
LE: loop exit
PB: predicated region body
PF: predicated region fallthrough
CT: control target
= control target key end

     0   :  { %vm20_vm0 = vcmask 261120   ;;  %s255_s0 = inlined_call_operand.vmem [shape: f32[96,32], index: 0, kind: input, shape index: {}]   ;;  %s256_s1 = inlined_call_operand.vmem [shape: f32[96,32], index: 1, kind: output, shape index: {}]  }
   0x1   :  { %v8_v0 = vld [vmem:[%s255_s0] sm:$0xff]  ;;  %v9_v1 = vld [vmem:[%s255_s0 + $0x8] sm:$0xff]  ;;  %v10_v2 = vld [vmem:[%s255_s0 + $0x10] sm:$0xff] }
   0x2   :  { %v11_v3 = vld [vmem:[%s255_s0 + $0x18] sm:$0xff]  ;;  %v21_v4 = vsel %vm20_vm0, %v8_v0, 0.0  ;;  %v22_v5 = vsel %vm20_vm0, %v9_v1, 0.0  ;;  %v24_v6 = vsel %vm20_vm0, %v10_v2, 0.0  ;;  %v12_v7 = vld [vmem:[%s255_s0 + $0x20] sm:$0xff]  ;;  %v13_v10 = vld [vmem:[%s255_s0 + $0x28] sm:$0xff] }
   0x3   :  { %v23_v8 = vadd.f32 %v22_v5, %v21_v4  ;;  %v26_v9 = vsel %vm20_vm0, %v11_v3, 0.0  ;;  %v28_v12 = vsel %vm20_vm0, %v12_v7, 0.0  ;;  %v14_v13 = vld [vmem:[%s255_s0 + $0x30] sm:$0xff]  ;;  %v30_v15 = vsel %vm20_vm0, %v13_v10, 0.0  ;;  %v15_v16 = vld [vmem:[%s255_s0 + $0x38] sm:$0xff]  ;;  %v16_v19 = vld [vmem:[%s255_s0 + $0x40] sm:$0xff] }
   0x4   :  { %v32_v18 = vsel %vm20_vm0, %v14_v13, 0.0  ;;  %v34_v21 = vsel %vm20_vm0, %v15_v16, 0.0  ;;  %v17_v22 = vld [vmem:[%s255_s0 + $0x48] sm:$0xff]  ;;  %v36_v24 = vsel %vm20_vm0, %v16_v19, 0.0  ;;  %v18_v25 = vld [vmem:[%s255_s0 + $0x50] sm:$0xff]  ;;  %v19_v28 = vld [vmem:[%s255_s0 + $0x58] sm:$0xff] }
   0x5   :  { %v25_v11 = vadd.f32 %v24_v6, %v23_v8  ;;  %v38_v27 = vsel %vm20_vm0, %v17_v22, 0.0  ;;  %v40_v30 = vsel %vm20_vm0, %v18_v25, 0.0  ;;  %v42_v32 = vsel %vm20_vm0, %v19_v28, 0.0 }
   0x7   :  { %v27_v14 = vadd.f32 %v26_v9, %v25_v11 }
   0x9   :  { %v29_v17 = vadd.f32 %v28_v12, %v27_v14 }
   0xb   :  { %v31_v20 = vadd.f32 %v30_v15, %v29_v17 }
   0xd   :  { %v33_v23 = vadd.f32 %v32_v18, %v31_v20 }
   0xf   :  { %v35_v26 = vadd.f32 %v34_v21, %v33_v23 }
  0x11   :  { %v37_v29 = vadd.f32 %v36_v24, %v35_v26 }
  0x13   :  { %v39_v31 = vadd.f32 %v38_v27, %v37_v29 }
  0x15   :  { %v41_v33 = vadd.f32 %v40_v30, %v39_v31 }
  0x17   :  { %v43_v34 = vadd.f32 %v42_v32, %v41_v33 }
  0x19   :  { %v44_v35 = vrot.slane %v43_v34, 4 }
  0x1b   :  { %v45_v36 = vadd.f32 %v44_v35, %v43_v34 }
  0x1d   :  { %v46_v37 = vrot.slane %v45_v36, 2 }
  0x1f   :  { %v47_v38 = vadd.f32 %v46_v37, %v45_v36 }
  0x21   :  { %v48_v39 = vrot.slane %v47_v38, 1 }
  0x23   :  { %v49_v40 = vadd.f32 %v48_v39, %v47_v38 }
  0x25   :  { %v51_v41 = vmul.f32 0.010416667, %v49_v40 }
  0x27   :  { %v52_v42 = vsub.f32 %v8_v0, %v51_v41  ;;  %v53_v43 = vsub.f32 %v9_v1, %v51_v41  ;;  %v54_v44 = vsub.f32 %v10_v2, %v51_v41  ;;  %v55_v45 = vsub.f32 %v11_v3, %v51_v41 }
  0x28   :  { %v56_v46 = vsub.f32 %v12_v7, %v51_v41  ;;  %v57_v50 = vsub.f32 %v13_v10, %v51_v41  ;;  %v58_v52 = vsub.f32 %v14_v13, %v51_v41  ;;  %v59_v58 = vsub.f32 %v15_v16, %v51_v41 }
  0x29   :  { %v64_v47 = vmul.f32 %v52_v42, %v52_v42  ;;  %v65_v48 = vmul.f32 %v53_v43, %v53_v43  ;;  %v66_v49 = vmul.f32 %v54_v44, %v54_v44  ;;  %v67_v51 = vmul.f32 %v55_v45, %v55_v45 }
  0x2a   :  { %v68_v53 = vmul.f32 %v56_v46, %v56_v46  ;;  %v69_v59 = vmul.f32 %v57_v50, %v57_v50  ;;  %v60_v62 = vsub.f32 %v16_v19, %v51_v41  ;;  %v70_v63 = vmul.f32 %v58_v52, %v58_v52 }
  0x2b   :  { %v76_v54 = vsel %vm20_vm0, %v64_v47, 0.0  ;;  %v77_v55 = vsel %vm20_vm0, %v65_v48, 0.0  ;;  %v79_v56 = vsel %vm20_vm0, %v66_v49, 0.0  ;;  %v81_v60 = vsel %vm20_vm0, %v67_v51, 0.0 }
  0x2c   :  { %v78_v57 = vadd.f32 %v77_v55, %v76_v54  ;;  %v83_v0 = vsel %vm20_vm0, %v68_v53, 0.0  ;;  %v61_v2 = vsub.f32 %v17_v22, %v51_v41  ;;  %v71_v3 = vmul.f32 %v59_v58, %v59_v58 }
  0x2d   :  { %v85_v4 = vsel %vm20_vm0, %v69_v59, 0.0  ;;  %v62_v6 = vsub.f32 %v18_v25, %v51_v41  ;;  %v72_v7 = vmul.f32 %v60_v62, %v60_v62  ;;  %v87_v8 = vsel %vm20_vm0, %v70_v63, 0.0 }
  0x2e   :  { %v80_v61 = vadd.f32 %v79_v56, %v78_v57  ;;  %v63_v10 = vsub.f32 %v19_v28, %v51_v41  ;;  %v73_v11 = vmul.f32 %v61_v2, %v61_v2  ;;  %v89_v12 = vsel %vm20_vm0, %v71_v3, 0.0 }
  0x2f   :  { %v74_v14 = vmul.f32 %v62_v6, %v62_v6  ;;  %v91_v15 = vsel %vm20_vm0, %v72_v7, 0.0 }
  0x30   :  { %v82_v1 = vadd.f32 %v81_v60, %v80_v61  ;;  %v75_v17 = vmul.f32 %v63_v10, %v63_v10  ;;  %v93_v18 = vsel %vm20_vm0, %v73_v11, 0.0 }
  0x31   :  { %v95_v20 = vsel %vm20_vm0, %v74_v14, 0.0 }
  0x32   :  { %v84_v5 = vadd.f32 %v83_v0, %v82_v1  ;;  %v97_v22 = vsel %vm20_vm0, %v75_v17, 0.0 }
  0x34   :  { %v86_v9 = vadd.f32 %v85_v4, %v84_v5 }
  0x36   :  { %v88_v13 = vadd.f32 %v87_v8, %v86_v9 }
  0x38   :  { %v90_v16 = vadd.f32 %v89_v12, %v88_v13 }
  0x3a   :  { %v92_v19 = vadd.f32 %v91_v15, %v90_v16 }
  0x3c   :  { %v94_v21 = vadd.f32 %v93_v18, %v92_v19 }
  0x3e   :  { %v96_v23 = vadd.f32 %v95_v20, %v94_v21 }
  0x40   :  { %v98_v24 = vadd.f32 %v97_v22, %v96_v23 }
  0x42   :  { %v99_v25 = vrot.slane %v98_v24, 4 }
  0x44   :  { %v100_v26 = vadd.f32 %v99_v25, %v98_v24 }
  0x46   :  { %v101_v27 = vrot.slane %v100_v26, 2 }
  0x48   :  { %v102_v28 = vadd.f32 %v101_v27, %v100_v26 }
  0x4a   :  { %v103_v29 = vrot.slane %v102_v28, 1 }
  0x4c   :  { %v104_v30 = vadd.f32 %v103_v29, %v102_v28 }
  0x4e   :  { %v105_v31 = vmul.f32 0.010416667, %v104_v30 }
  0x50   :  { %135 = vrsqrt.f32 %v105_v31 }
  0x5a   :  { %v136_v32 = vpop.eup %135 }
  0x5b   :  { %v107_v33 = vmul.f32 %v136_v32, %v52_v42  ;;  %v108_v34 = vmul.f32 %v136_v32, %v53_v43  ;;  %v109_v35 = vmul.f32 %v136_v32, %v54_v44  ;;  %v110_v36 = vmul.f32 %v136_v32, %v55_v45 }
  0x5c   :  { %v111_v37 = vmul.f32 %v136_v32, %v56_v46  ;;  %v112_v38 = vmul.f32 %v136_v32, %v57_v50  ;;  %v113_v39 = vmul.f32 %v136_v32, %v58_v52  ;;  %v114_v40 = vmul.f32 %v136_v32, %v59_v58 }
  0x5d   :  { %119 = vst.msk [vmem:[%s256_s1] sm:$0xff] %vm20_vm0, %v107_v33  ;;  %120 = vst.msk [vmem:[%s256_s1 + $0x8] sm:$0xff] %vm20_vm0, %v108_v34  ;;  %v115_v41 = vmul.f32 %v136_v32, %v60_v62  ;;  %v116_v42 = vmul.f32 %v136_v32, %v61_v2  ;;  %v117_v43 = vmul.f32 %v136_v32, %v62_v6 }
  0x5e   :  { %121 = vst.msk [vmem:[%s256_s1 + $0x10] sm:$0xff] %vm20_vm0, %v109_v35  ;;  %122 = vst.msk [vmem:[%s256_s1 + $0x18] sm:$0xff] %vm20_vm0, %v110_v36  ;;  %v118_v44 = vmul.f32 %v136_v32, %v63_v10 }
  0x5f   :  { %123 = vst.msk [vmem:[%s256_s1 + $0x20] sm:$0xff] %vm20_vm0, %v111_v37  ;;  %124 = vst.msk [vmem:[%s256_s1 + $0x28] sm:$0xff] %vm20_vm0, %v112_v38 }
  0x60   :  { %125 = vst.msk [vmem:[%s256_s1 + $0x30] sm:$0xff] %vm20_vm0, %v113_v39  ;;  %126 = vst.msk [vmem:[%s256_s1 + $0x38] sm:$0xff] %vm20_vm0, %v114_v40 }
  0x61   :  { %127 = vst.msk [vmem:[%s256_s1 + $0x40] sm:$0xff] %vm20_vm0, %v115_v41  ;;  %128 = vst.msk [vmem:[%s256_s1 + $0x48] sm:$0xff] %vm20_vm0, %v116_v42 }
  0x62   :  { %129 = vst.msk [vmem:[%s256_s1 + $0x50] sm:$0xff] %vm20_vm0, %v117_v43  ;;  %130 = vst.msk [vmem:[%s256_s1 + $0x58] sm:$0xff] %vm20_vm0, %v118_v44 }

</bundles_post_ra>
